<compile_context>
chip_gen: v6e
topology: v6e:2x2x1
jax: 0.10.0
libtpu: 0.0.40
codegen_flags: <defaults>
</compile_context>

<pallas_src>
import functools

import jax
import jax.numpy as jnp
from jax import lax
from jax.experimental import pallas as pl
from jax.experimental.pallas import tpu as pltpu


def _maxpool2_flat_kernel(x_ref, o_ref, *, H, W):
    """kernel_size=2 / stride=1 max pool with replicate right/bottom pad.

    Blocks are (c_blk, H*W); the spatial plane is flattened so the lane axis is dense.
      out[i, j] = max(x[i, j], x[i, j+1], x[i+1, j], x[i+1, j+1])
    with indices clamped to the last row / column (== replicate padding).
    Shifts are pltpu.roll along lanes (XLU) + a (1, L) boundary mask broadcast over
    sublanes; roll never mixes channel rows, so padded partial blocks stay isolated.
    """
    x = x_ref[...]                                   # (c_blk, L), input dtype
    L = H * W

    # Tiny (1, L) column index; broadcast along sublanes inside jnp.where.
    col = lax.broadcasted_iota(jnp.int32, (1, L), 1)

    # ---- horizontal neighbour (j+1, clamped to W-1), separable first pass ----
    if W > 1:
        # roll by L-1  <=>  nxt[:, j] = x[:, (j+1) % L]   (single XLU pass)
        nxt = pltpu.roll(x, L - 1, 1)
        # last column of each row (incl. j == L-1, where the roll wrapped): clamp to x
        nxt = jnp.where(col % W == W - 1, x, nxt)
        hmax = jnp.maximum(x, nxt)
    else:
        hmax = x

    # ---- vertical neighbour (i+1, clamped to H-1), separable second pass ----
    if H > 1:
        # roll by L-W  <=>  down[:, j] = hmax[:, (j+W) % L]
        down = pltpu.roll(hmax, L - W, 1)
        # last row wrapped around to the first row: clamp to hmax (replicate pad)
        down = jnp.where(col >= L - W, hmax, down)
        out = jnp.maximum(hmax, down)
    else:
        out = hmax

    o_ref[...] = out


def _block_budget_bytes():
    """Per-block VMEM budget. ~2 MiB is past the measured pipelining knee; allow
    ~3 MiB on the 128 MiB-VMEM parts (v5e/v6e). Sized so double-buffered in+out
    plus a few compute temporaries stay well inside the scoped-VMEM limit we request."""
    budget = 2 << 20
    try:
        vmem = pltpu.get_tpu_info().vmem_capacity_bytes
        if vmem >= (96 << 20):        # v5e / v6e class parts (128 MiB physical)
            budget = 3 << 20
    except Exception:                 # pragma: no cover - info query unavailable
        pass
    return budget


def _choose_c_block(NC, per_chan_bytes, sub, max_block_bytes=None):
    """Channel-block size over the collapsed N*C axis: big enough to amortize the
    ~0.35us per-step overhead and reach HBM bandwidth, small enough to fit VMEM,
    and keeping >= 8 grid steps (>= 4 per TensorCore on v7x) when NC permits."""
    budget = max_block_bytes if max_block_bytes is not None else _block_budget_bytes()
    cb = max(sub, budget // per_chan_bytes)
    # Never shrink a block below ~512 KiB (pipelining knee) just to add steps.
    min_cb = max(sub, (512 << 10) // per_chan_bytes)
    if NC >= 8 * min_cb:
        cb = min(cb, max(min_cb, NC // 8))
    if NC <= cb:
        return NC                                    # whole-axis block (always layout-legal)
    return max(sub, (cb // sub) * sub)               # sublane-aligned; last block may be partial


def _maxpool_stride1_xla(x, kernel_size):
    """Plain-JAX replicate-pad + MaxPool2d(k, stride=k-1). Reference + fallback."""
    pad = kernel_size - 1
    xp = jnp.pad(x, ((0, 0), (0, 0), (0, pad), (0, pad)), mode="edge")
    if jnp.issubdtype(x.dtype, jnp.floating):
        init = jnp.array(-jnp.inf, x.dtype)
    else:
        init = jnp.array(jnp.iinfo(x.dtype).min, x.dtype)
    return lax.reduce_window(
        xp, init, lax.max,
        window_dimensions=(1, 1, kernel_size, kernel_size),
        window_strides=(1, 1, pad, pad),
        padding="VALID",
    )


def maxpool_stride1(x, kernel_size, *, _max_block_bytes=None):
    """Pallas implementation of darknet MaxPoolStride1.forward on NCHW input."""
    if kernel_size == 1:
        # pad = 0 -> stride = 0; the PyTorch module itself is invalid here.
        raise ValueError("kernel_size=1 gives stride=0, which is invalid (as in PyTorch).")

    N, C, H, W = x.shape

    if kernel_size != 2:
        # TODO(synk): general kernel_size (window k, stride k-1) path is not ported to
        # Pallas (darknet only uses kernel_size=2); fall back to XLA reduce_window.
        return _maxpool_stride1_xla(x, kernel_size)

    HW = H * W
    NC = N * C
    itemsize = x.dtype.itemsize
    sub = 16 if itemsize <= 2 else 8                 # sublane granularity (bf16 packs 16)
    lanes = pl.cdiv(HW, 128) * 128                   # padded lane footprint in VMEM
    per_chan = lanes * itemsize

    # Large-spatial guard: if even the smallest legal block (min(NC, sub) channels)
    # would be huge, the double-buffered working set could exceed v7x's 64 MiB VMEM.
    # TODO(synk): add a halo-tiled H*W path for very large planes instead of falling back.
    min_chans = NC if NC <= sub else sub
    if min_chans * per_chan > (4 << 20):
        return _maxpool_stride1_xla(x, kernel_size)

    c_blk = _choose_c_block(NC, per_chan, sub, _max_block_bytes)
    grid = (pl.cdiv(NC, c_blk),)

    # Collapsing contiguous NCHW dims is a free (metadata-only) reshape: no extra HBM
    # traffic, uniform maximally-sized blocks, and a lane-dense H*W output axis.
    x_flat = x.reshape(NC, HW)

    out_flat = pl.pallas_call(
        functools.partial(_maxpool2_flat_kernel, H=H, W=W),
        out_shape=jax.ShapeDtypeStruct((NC, HW), x.dtype),
        grid=grid,
        in_specs=[pl.BlockSpec((c_blk, HW), lambda i: (i, 0))],
        out_specs=pl.BlockSpec((c_blk, HW), lambda i: (i, 0)),
        compiler_params=pltpu.CompilerParams(
            dimension_semantics=("parallel",),
            # Safe on every generation (v7x has 64 MiB physical per TC); gives headroom
            # for double-buffered in+out blocks plus a few compute temporaries.
            vmem_limit_bytes=48 * 1024 * 1024,
        ),
        cost_estimate=pl.CostEstimate(
            flops=3 * NC * HW,                       # pure-bandwidth op: let XLA overlap it
            transcendentals=0,
            bytes_accessed=2 * NC * HW * itemsize,
        ),
    )(x_flat)

    # kernel_size=2, stride=1 => H_out == H, W_out == W.
    return out_flat.reshape(N, C, H, W)


if __name__ == "__main__":
    key = jax.random.PRNGKey(0)
    keys = jax.random.split(key, 4)

    # (shape, dtype, block-budget override): primary small case; a darknet-like 13x13
    # case forced into a multi-step grid with a partial last channel block; bf16 with a
    # sub-128 lane plane; and a bigger-plane bf16 case.
    cases = [
        ((2, 4, 16, 16), jnp.float32, None),
        ((1, 100, 13, 13), jnp.float32, 16 * 1024),
        ((2, 64, 8, 8), jnp.bfloat16, None),
        ((2, 32, 26, 26), jnp.bfloat16, None),
    ]
    for kk, (shape, dtype, blk) in zip(keys, cases):
        x = jax.random.normal(kk, shape, dtype=jnp.float32).astype(dtype)
        out = jax.block_until_ready(maxpool_stride1(x, 2, _max_block_bytes=blk))
        ref = _maxpool_stride1_xla(x, 2)
        assert out.shape == ref.shape, (shape, out.shape, ref.shape)
        assert jnp.allclose(out.astype(jnp.float32), ref.astype(jnp.float32)), (
            f"Pallas max-pool mismatch for shape={shape} dtype={dtype}")

    print("KERNEL_OK")
</pallas_src>

<mosaic_0001>
module attributes {stable_mosaic.version = 11 : i64} {
  func.func @_maxpool2_flat_kernel(%arg0: i32, %arg1: memref<8x256xf32, #tpu.memory_space<vmem>>, %arg2: memref<8x256xf32, #tpu.memory_space<vmem>>) attributes {dimension_semantics = [#tpu.dimension_semantics<parallel>], iteration_bounds = array<i64: 1>, scalar_prefetch = 0 : i64, scratch_operands = 0 : i64, tpu.core_type = #tpu.core_type<tc>, window_params = [{transform_indices = @transform_0, window_bounds = array<i64: 8, 256>}, {transform_indices = @transform_1, window_bounds = array<i64: 8, 256>}]} {
    %c0 = arith.constant 0 : index
    %c0_0 = arith.constant 0 : index
    %0 = vector.load %arg1[%c0, %c0_0] : memref<8x256xf32, #tpu.memory_space<vmem>>, vector<8x256xf32>
    %1 = tpu.iota {dimensions = array<i32: 1>} : vector<1x256xi32>
    %c255_i32 = arith.constant 255 : i32
    %2 = tpu.dynamic_rotate %0 by %c255_i32 dim 1 : vector<8x256xf32>, i32 -> vector<8x256xf32>
    %c16_i32 = arith.constant 16 : i32
    %c0_i32 = arith.constant 0 : i32
    %3 = arith.cmpi eq, %c16_i32, %c0_i32 : i32
    %c1_i32 = arith.constant 1 : i32
    %4 = arith.select %3, %c1_i32, %c16_i32 : i32
    %5 = vector.broadcast %4 : i32 to vector<1x256xi32>
    %6 = arith.remsi %1, %5 : vector<1x256xi32>
    %c0_i32_1 = arith.constant 0 : i32
    %7 = vector.broadcast %c0_i32_1 : i32 to vector<1x256xi32>
    %8 = arith.cmpi ne, %6, %7 : vector<1x256xi32>
    %c0_i32_2 = arith.constant 0 : i32
    %9 = vector.broadcast %c0_i32_2 : i32 to vector<1x256xi32>
    %10 = arith.cmpi slt, %6, %9 : vector<1x256xi32>
    %c0_i32_3 = arith.constant 0 : i32
    %11 = arith.cmpi slt, %4, %c0_i32_3 : i32
    %12 = vector.broadcast %11 : i1 to vector<1x256xi1>
    %13 = vector.broadcast %12 : vector<1x256xi1> to vector<1x256xi1>
    %14 = arith.xori %10, %13 : vector<1x256xi1>
    %15 = arith.andi %14, %8 : vector<1x256xi1>
    %16 = vector.broadcast %4 : i32 to vector<1x256xi32>
    %17 = arith.addi %6, %16 : vector<1x256xi32>
    %18 = arith.select %15, %17, %6 : vector<1x256xi1>, vector<1x256xi32>
    %c15_i32 = arith.constant 15 : i32
    %19 = vector.broadcast %c15_i32 : i32 to vector<1x256xi32>
    %20 = arith.cmpi eq, %18, %19 : vector<1x256xi32>
    %21 = vector.shape_cast %20 : vector<1x256xi1> to vector<1x256xi1>
    %22 = vector.broadcast %21 : vector<1x256xi1> to vector<8x256xi1>
    %23 = arith.select %22, %0, %2 : vector<8x256xi1>, vector<8x256xf32>
    %24 = arith.maximumf %0, %23 : vector<8x256xf32>
    %c240_i32 = arith.constant 240 : i32
    %25 = tpu.dynamic_rotate %24 by %c240_i32 dim 1 : vector<8x256xf32>, i32 -> vector<8x256xf32>
    %c240_i32_4 = arith.constant 240 : i32
    %26 = vector.broadcast %c240_i32_4 : i32 to vector<1x256xi32>
    %27 = arith.cmpi sge, %1, %26 : vector<1x256xi32>
    %28 = vector.shape_cast %27 : vector<1x256xi1> to vector<1x256xi1>
    %29 = vector.broadcast %28 : vector<1x256xi1> to vector<8x256xi1>
    %30 = arith.select %29, %24, %25 : vector<8x256xi1>, vector<8x256xf32>
    %31 = arith.maximumf %24, %30 : vector<8x256xf32>
    %c0_5 = arith.constant 0 : index
    %c0_6 = arith.constant 0 : index
    %32 = vector.load %arg2[%c0_5, %c0_6] : memref<8x256xf32, #tpu.memory_space<vmem>>, vector<8x256xf32>
    tpu.vector_store %arg2[%c0_5, %c0_6], %31 {strides = array<i32>} : memref<8x256xf32, #tpu.memory_space<vmem>>, vector<8x256xf32>,
    return
  }
  func.func @transform_0(%arg0: i32) -> (i32, i32) {
    %c0_i32 = arith.constant 0 : i32
    %c0_i32_0 = arith.constant 0 : i32
    return %arg0, %c0_i32 : i32, i32
  }
  func.func @transform_1(%arg0: i32) -> (i32, i32) {
    %c0_i32 = arith.constant 0 : i32
    %c0_i32_0 = arith.constant 0 : i32
    return %arg0, %c0_i32 : i32, i32
  }
}

</mosaic_0001>

<bundles_post_ra>
// kernel: tpu_custom_call.1
= control target key start
LH: loop header
LB: loop body
LE: loop exit
PB: predicated region body
PF: predicated region fallthrough
CT: control target
= control target key end

     0   :  { %6 = vsyncpa [#allocation3], 0  ;;  %s169_s0 = inlined_call_operand.hbm [shape: f32[8,256], index: 0, kind: input, shape index: {}]   ;;  %s170_s1 = inlined_call_operand.hbm [shape: f32[8,256], index: 1, kind: output, shape index: {}]  }
   0x1   :  { %7 = vsyncpa [#allocation4], 0  ;;  %s149_s6 = smov [#allocation2]  }
   0x2   :  { %s14_s7 = sshll.u32 %s149_s6, 4  ;;  %s15_s7 = int_to_ptr.vmem [resolvable:$true] %s14_s7 }
   0x3   :  { %s113_s8 = scalar_lea.vmem %s15_s7, 256  ;;  %p118_p1 = scmp.lt.s32.totalorder %s15_s7, %s15_s7 }
   0x4   :  { %p114_p0 = scmp.ne.s32.totalorder %s15_s7, %s113_s8  ;;  %p119_p2 = scmp.lt.s32.totalorder %s113_s8, %s113_s8 }
   0x6   :  { %p120_p3 = por %p119_p2, %p118_p1 }
   0x8   :  { %p121_p4 = pnand %p120_p3, %p114_p0 }
   0xa   :  { %124 = shalt.err (!%p121_p4)
}
   0xb   :  { %17 = dma.hbm_to_vmem [thread:$0]  %s169_s0, 256, %s15_s7, [#allocation3]  }
   0xc   :  { %145 = dma.done.wait [#allocation3], 256  }
   0xd   :  { %146 = vsyncadd [#allocation3], 4294967040  ;;  %v21_v0 = vld [vmem:[#allocation2] sm:$0xff]  ;;  %s150_s11 = smov 127   ;;  %v22_v1 = vld [vmem:[#allocation2 + $0x8] sm:$0xff]  ;;  %v23_v2 = vlaneseq  ;;  %s151_s0 = smov 112  }
   0xe   :  { %26 = vrot.lane.b32.xlu0 %v21_v0, %s150_s11  ;;  %s152_s12 = smov [#allocation5]  }
   0xf   :  { %v24_v3 = vand.u32 127, %v23_v2  ;;  %s92_s13 = sshll.u32 %s152_s12, 4  ;;  %s93_s13 = int_to_ptr.vmem [resolvable:$true] %s92_s13 }
  0x10   :  { %s125_s14 = scalar_lea.vmem %s93_s13, 256  ;;  %p130_p6 = scmp.lt.s32.totalorder %s93_s13, %s93_s13 }
  0x11   :  { %v25_v4 = vadd.s32 128, %v24_v3  ;;  %v37_v5 = vand.u32 15, %v24_v3  ;;  %vm30_vm0 = vcmp.lt.s32.totalorder %v24_v3, 127  ;;  %vm71_vm3 = vcmp.lt.s32.totalorder %v24_v3, 112  ;;  %p126_p5 = scmp.ne.s32.totalorder %s93_s13, %s125_s14  ;;  %p131_p7 = scmp.lt.s32.totalorder %s125_s14, %s125_s14 }
  0x12   :  { %28 = vrot.lane.b32.xlu0 %v22_v1, %s150_s11 }
  0x13   :  { %v44_v7 = vand.u32 15, %v25_v4  ;;  %vm57_vm1 = vcmp.eq.s32.totalorder %v37_v5, 15  ;;  %vm75_vm4 = vcmp.ge.s32.totalorder %v25_v4, 240  ;;  %p132_p8 = por %p131_p7, %p130_p6 }
  0x15   :  { %vm58_vm2 = vcmp.eq.s32.totalorder %v44_v7, 15  ;;  %p133_p9 = pnand %p132_p8, %p126_p5 }
  0x80   :  { %v27_v6 = vpop.permute.xlu0 %26 }
  0x84   :  { %v29_v8 = vpop.permute.xlu0 %28 }
  0x85   :  { %v31_v9 = vsel %vm30_vm0, %v27_v6, %v29_v8  ;;  %v32_v10 = vsel %vm30_vm0, %v29_v8, %v27_v6 }
  0x86   :  { %v63_v11 = vsel %vm57_vm1, %v21_v0, %v31_v9  ;;  %v64_v13 = vsel %vm58_vm2, %v22_v1, %v32_v10 }
  0x87   :  { %v65_v12 = vmax.f32 %v21_v0, %v63_v11  ;;  %v66_v14 = vmax.f32 %v22_v1, %v64_v13 }
  0x89   :  { %67 = vrot.lane.b32.xlu1 %v65_v12, %s151_s0 }
  0x8d   :  { %69 = vrot.lane.b32.xlu1 %v66_v14, %s151_s0 }
  0xfb   :  { %v68_v15 = vpop.permute.xlu1 %67 }
  0xff   :  { %v70_v16 = vpop.permute.xlu1 %69 }
 0x100   :  { %v72_v17 = vsel %vm71_vm3, %v68_v15, %v70_v16  ;;  %v73_v18 = vsel %vm71_vm3, %v70_v16, %v68_v15 }
 0x101   :  { %v81_v19 = vsel %vm75_vm4, %v66_v14, %v73_v18  ;;  %v82_v20 = vmax.f32 %v65_v12, %v72_v17 }
 0x102   :  { %v83_v21 = vmax.f32 %v66_v14, %v81_v19 }
 0x103   :  { %84 = vst [vmem:[#allocation5] sm:$0xff] %v82_v20 }
 0x104   :  { %85 = vst [vmem:[#allocation5 + $0x8] sm:$0xff] %v83_v21 }
 0x105   :  { %136 = shalt.err (!%p133_p9)
}
 0x106   :  { %95 = dma.vmem_to_hbm [thread:$0]  %s93_s13, 256, %s170_s1, [#allocation4]  }
 0x107   :  { %147 = dma.done.wait [#allocation4], 256  }
 0x108   :  { %148 = vsyncadd [#allocation4], 4294967040 }
 0x109   :  { %99 = vsyncpa [#allocation3], 1 }
 0x10a   :  { %100 = vsyncpa [#allocation4], 1 }

</bundles_post_ra>
